<compile_context>
chip_gen: v7x
topology: tpu7x:2x2x1
jax: 0.10.0
libtpu: 0.0.40
codegen_flags: <defaults>
</compile_context>

<pallas_src>
import functools

import jax
import jax.numpy as jnp
from jax import lax
from jax.experimental import pallas as pl
from jax.experimental.pallas import tpu as pltpu


# ----------------------------- global tiling knobs -----------------------------

try:
    _DEVICE_KIND = jax.devices()[0].device_kind.lower()
except Exception:  # pragma: no cover - defensive
    _DEVICE_KIND = ""

# v5e MXU is 128 wide; v6e/v7x are 256 wide.
_PREF_TN = 128 if "v5" in _DEVICE_KIND else 256
# v5e/v6e have 128 MiB physical VMEM, v7x only 64 MiB.
if ("v5" in _DEVICE_KIND) or ("v6" in _DEVICE_KIND):
    _VMEM_LIMIT = 100 * 1024 * 1024
else:
    _VMEM_LIMIT = 48 * 1024 * 1024


def _pick_tn(c):
    if c % _PREF_TN == 0:
        return _PREF_TN
    if c % 128 == 0:
        return 128
    return c  # full channel dim (e.g. 64) -> allowed as a full block


def _pick_th(h, w):
    """Rows per conv tile: make M = TH*W land around 512 so the MXU sees
    full-height matmuls.  Falls back to full H for small images or when W is
    not sublane aligned (the flat row tile must be a multiple of 8)."""
    if h * w <= 1024 or w % 8 != 0:
        return h
    target = -(-512 // w)  # ceil(512 / w)
    best = 1
    for th in range(1, h + 1):
        if h % th:
            continue
        if th * w > 1024:
            break
        best = th
        if th >= target:
            break
    return best


def _pick_rows(r, cap=1024):
    """Row tile for elementwise kernels: divides R, multiple of 8 (or full R)."""
    if r <= cap:
        return r
    for tm in range(cap, 7, -1):
        if r % tm == 0 and tm % 8 == 0:
            return tm
    return r


def _cparams(*sem):
    return pltpu.CompilerParams(dimension_semantics=sem,
                                vmem_limit_bytes=_VMEM_LIMIT)


# ----------------------------- 3x3 conv kernel -----------------------------

def _conv_taps(win, w_ref, b_ref, M, W, TN):
    """Accumulate the 9 shifted tap matmuls over a flattened window.

    win : (M + 2*W + 2, Cin) bf16 -- rows are the flattened (row-major) pixels
          of virtual image rows [tile_row-1, tile_row+TH+1), with the H
          boundary already zeroed and one extra zero row at each end.
    Tap (dy, dx) for output flat index p reads window row p + dy*W + dx; the
    out-of-range W-edge columns are masked to zero.
    """
    acc = jnp.broadcast_to(b_ref[...].astype(jnp.float32), (M, TN))
    if W > 1:
        col = lax.broadcasted_iota(jnp.int32, (M, 1), 0) % W
        mask_l = col > 0          # dx = 0 taps are invalid at output col 0
        mask_r = col < (W - 1)    # dx = 2 taps are invalid at output col W-1
    for dy in range(3):
        for dx in range(3):
            if W == 1 and dx != 1:
                continue  # those taps only ever read out-of-bounds zeros
            start = dy * W + dx
            a = win[start:start + M, :]
            if W > 1 and dx == 0:
                a = jnp.where(mask_l, a, 0)
            elif W > 1 and dx == 2:
                a = jnp.where(mask_r, a, 0)
            acc = acc + jnp.dot(a, w_ref[dy * 3 + dx],
                                preferred_element_type=jnp.float32)
    return acc


def _write_conv_outputs(acc, o_ref, st_ref):
    o_ref[0] = acc.astype(o_ref.dtype)
    st_ref[0, 0] = jnp.concatenate(
        [jnp.sum(acc, axis=0, keepdims=True),
         jnp.sum(acc * acc, axis=0, keepdims=True)], axis=0)


@functools.lru_cache(maxsize=None)
def _make_conv_full_kernel(W):
    """Whole image in one row tile (nI == 1): halos are plain zeros."""
    def kernel(xm_ref, w_ref, b_ref, o_ref, st_ref):
        Cin = xm_ref.shape[2]
        M = o_ref.shape[1]
        TN = o_ref.shape[2]
        zpad = jnp.zeros((W + 1, Cin), xm_ref.dtype)
        win = jnp.concatenate([zpad, xm_ref[0], zpad], axis=0)
        acc = _conv_taps(win, w_ref, b_ref, M, W, TN)
        _write_conv_outputs(acc, o_ref, st_ref)
    return kernel


@functools.lru_cache(maxsize=None)
def _make_conv_tiled_kernel(W):
    """Row-tiled variant (nI > 1): one-row halos above/below, zeroed at the
    image boundary with an iota mask (no scalar->vector bool broadcast)."""
    def kernel(xm_ref, xt_ref, xb_ref, w_ref, b_ref, o_ref, st_ref):
        i = pl.program_id(2)
        last = pl.num_programs(2) - 1
        Cin = xm_ref.shape[2]
        M = o_ref.shape[1]
        TN = o_ref.shape[2]
        row = lax.broadcasted_iota(jnp.int32, (W, 1), 0)
        top = jnp.where(row < jnp.minimum(i, 1) * W, xt_ref[0], 0)
        bot = jnp.where(row < jnp.minimum(last - i, 1) * W, xb_ref[0], 0)
        z1 = jnp.zeros((1, Cin), xm_ref.dtype)
        win = jnp.concatenate([z1, top, xm_ref[0], bot, z1], axis=0)
        acc = _conv_taps(win, w_ref, b_ref, M, W, TN)
        _write_conv_outputs(acc, o_ref, st_ref)
    return kernel


def conv3x3(x, w9, bias):
    """x: (N,H,W,Cin) bf16, w9: (9,Cin,Cout) bf16, bias: (1,Cout) f32.

    Returns (y, stats): y (N, H*W, Cout) bf16 and per-tile channel statistics
    stats (N, nI, 2, Cout) f32 holding (sum, sum_sq) of the f32 accumulator.
    """
    N, H, W, Cin = x.shape
    Cout = w9.shape[-1]
    TN = _pick_tn(Cout)
    TH = _pick_th(H, W)
    nI = H // TH
    nJ = Cout // TN
    M = TH * W
    xf = x.reshape(N, H * W, Cin)

    w_spec = pl.BlockSpec((9, Cin, TN), lambda n, j, i: (0, 0, j))
    b_spec = pl.BlockSpec((1, TN), lambda n, j, i: (0, j))
    o_spec = pl.BlockSpec((1, M, TN), lambda n, j, i: (n, i, j))
    st_spec = pl.BlockSpec((1, 1, 2, TN), lambda n, j, i: (n, i, 0, j))
    out_shapes = (jax.ShapeDtypeStruct((N, H * W, Cout), jnp.bfloat16),
                  jax.ShapeDtypeStruct((N, nI, 2, Cout), jnp.float32))

    if nI == 1:
        kern = _make_conv_full_kernel(W)
        in_specs = [pl.BlockSpec((1, M, Cin), lambda n, j, i: (n, 0, 0)),
                    w_spec, b_spec]
        args = (xf, w9, bias)
    else:
        kern = _make_conv_tiled_kernel(W)
        main_spec = pl.BlockSpec((1, M, Cin), lambda n, j, i: (n, i, 0))
        # Halo blocks are one image row (W flat rows); the clamped indices are
        # only read when the kernel zeroes them anyway.
        top_spec = pl.BlockSpec(
            (1, W, Cin), lambda n, j, i: (n, jnp.maximum(i * TH - 1, 0), 0))
        bot_spec = pl.BlockSpec(
            (1, W, Cin), lambda n, j, i: (n, jnp.minimum(i * TH + TH, H - 1), 0))
        in_specs = [main_spec, top_spec, bot_spec, w_spec, b_spec]
        args = (xf, xf, xf, w9, bias)

    return pl.pallas_call(
        kern,
        out_shape=out_shapes,
        grid=(N, nJ, nI),
        in_specs=in_specs,
        out_specs=(o_spec, st_spec),
        compiler_params=_cparams("parallel", "parallel", "parallel"),
    )(*args)


# ----------------------------- BN apply (+ReLU, +residual) -----------------------------

def _bn_apply_kernel(y_ref, s_ref, t_ref, o_ref):
    y = y_ref[...].astype(jnp.float32)
    o_ref[...] = jnp.maximum(y * s_ref[...] + t_ref[...], 0.0).astype(o_ref.dtype)


def _bn_apply_add_kernel(y_ref, s_ref, t_ref, r_ref, o_ref):
    y = y_ref[...].astype(jnp.float32)
    z = jnp.maximum(y * s_ref[...] + t_ref[...], 0.0) + r_ref[...].astype(jnp.float32)
    o_ref[...] = z.astype(o_ref.dtype)


def _bn_scale_shift(stats, gamma, beta, count):
    # Exact f32 batch statistics from the per-tile partial sums (tiny XLA ops).
    s = jnp.sum(stats[:, :, 0, :], axis=(0, 1))
    sq = jnp.sum(stats[:, :, 1, :], axis=(0, 1))
    mean = s / count
    var = jnp.maximum(sq / count - mean * mean, 0.0)
    scale = gamma[0] * lax.rsqrt(var + 1e-5)
    shift = beta[0] - mean * scale
    return scale[None, :], shift[None, :]


def bn_apply(y2, scale, shift, residual2=None):
    """y2: (R, C) bf16 conv output; scale/shift: (1, C) f32; residual2 bf16."""
    R, C = y2.shape
    TC = _pick_tn(C)
    TM = _pick_rows(R)
    if R // TM == 1 and C // TC == 1 and R % 16 == 0:
        TM = R // 2  # give v7x's second core something to do
    grid = (R // TM, C // TC)
    y_spec = pl.BlockSpec((TM, TC), lambda i, j: (i, j))
    v_spec = pl.BlockSpec((1, TC), lambda i, j: (0, j))
    out_shape = jax.ShapeDtypeStruct((R, C), jnp.bfloat16)
    if residual2 is None:
        return pl.pallas_call(
            _bn_apply_kernel, out_shape=out_shape, grid=grid,
            in_specs=[y_spec, v_spec, v_spec], out_specs=y_spec,
            compiler_params=_cparams("parallel", "parallel"),
        )(y2, scale, shift)
    return pl.pallas_call(
        _bn_apply_add_kernel, out_shape=out_shape, grid=grid,
        in_specs=[y_spec, v_spec, v_spec, y_spec], out_specs=y_spec,
        compiler_params=_cparams("parallel", "parallel"),
    )(y2, scale, shift, residual2)


# ----------------------------- 1x1 conv matmuls -----------------------------

def _mm_kernel(a_ref, w_ref, b_ref, o_ref):
    acc = jnp.dot(a_ref[...], w_ref[...], preferred_element_type=jnp.float32)
    o_ref[...] = (acc + b_ref[...]).astype(o_ref.dtype)


def _mm_dual_kernel(a1_ref, w1_ref, a2_ref, w2_ref, b_ref, o_ref):
    # 1x1 conv over a channel concat without materializing the concat.
    acc = jnp.dot(a1_ref[...], w1_ref[...], preferred_element_type=jnp.float32)
    acc = acc + jnp.dot(a2_ref[...], w2_ref[...],
                        preferred_element_type=jnp.float32)
    o_ref[...] = (acc + b_ref[...]).astype(o_ref.dtype)


def _mm_tiles(M):
    if M <= 512:
        return M, M
    TM = 256
    Mp = ((M + TM - 1) // TM) * TM
    return TM, Mp


def _pad_cout(ws, bias):
    cout = ws[0].shape[-1]
    cp = cout if cout % 128 == 0 else ((cout + 127) // 128) * 128
    if cp != cout:
        ws = [jnp.pad(w, ((0, 0), (0, cp - cout))) for w in ws]
        bias = jnp.pad(bias, ((0, 0), (0, cp - cout)))
    return ws, bias, cout, cp


def _matmul(a, w, bias, out_dtype):
    M, K = a.shape
    (w,), bias, Cout, Cp = _pad_cout([w], bias)
    TN = _pick_tn(Cp)
    TM, Mp = _mm_tiles(M)
    a_p = a if Mp == M else jnp.pad(a, ((0, Mp - M), (0, 0)))
    # Row tiles iterate innermost so the (K, TN) weight panel stays resident.
    out = pl.pallas_call(
        _mm_kernel,
        out_shape=jax.ShapeDtypeStruct((Mp, Cp), out_dtype),
        grid=(Cp // TN, Mp // TM),
        in_specs=[pl.BlockSpec((TM, K), lambda j, i: (i, 0)),
                  pl.BlockSpec((K, TN), lambda j, i: (0, j)),
                  pl.BlockSpec((1, TN), lambda j, i: (0, j))],
        out_specs=pl.BlockSpec((TM, TN), lambda j, i: (i, j)),
        compiler_params=_cparams("parallel", "parallel"),
    )(a_p, w, bias)
    if Mp != M:
        out = out[:M]
    if Cp != Cout:
        out = out[:, :Cout]
    return out


def _matmul_dual(a1, a2, w1, w2, bias, out_dtype):
    M, K1 = a1.shape
    K2 = a2.shape[1]
    (w1, w2), bias, Cout, Cp = _pad_cout([w1, w2], bias)
    TN = _pick_tn(Cp)
    TM, Mp = _mm_tiles(M)
    if Mp != M:
        a1 = jnp.pad(a1, ((0, Mp - M), (0, 0)))
        a2 = jnp.pad(a2, ((0, Mp - M), (0, 0)))
    out = pl.pallas_call(
        _mm_dual_kernel,
        out_shape=jax.ShapeDtypeStruct((Mp, Cp), out_dtype),
        grid=(Cp // TN, Mp // TM),
        in_specs=[pl.BlockSpec((TM, K1), lambda j, i: (i, 0)),
                  pl.BlockSpec((K1, TN), lambda j, i: (0, j)),
                  pl.BlockSpec((TM, K2), lambda j, i: (i, 0)),
                  pl.BlockSpec((K2, TN), lambda j, i: (0, j)),
                  pl.BlockSpec((1, TN), lambda j, i: (0, j))],
        out_specs=pl.BlockSpec((TM, TN), lambda j, i: (i, j)),
        compiler_params=_cparams("parallel", "parallel"),
    )(a1, w1, a2, w2, bias)
    if Mp != M:
        out = out[:M]
    if Cp != Cout:
        out = out[:, :Cout]
    return out


# ----------------------------- NHWC glue / blocks -----------------------------

def conv3x3_bn_relu(x, p, residual=None):
    """3x3 conv + training-mode BatchNorm + ReLU (+fused residual add)."""
    N, H, W, _ = x.shape
    Cout = p['w'].shape[-1]
    y, stats = conv3x3(x, p['w'], p['b'])                   # bf16, f32 stats
    scale, shift = _bn_scale_shift(stats, p['gamma'], p['beta'], N * H * W)
    r2 = None if residual is None else residual.reshape(N * H * W, Cout)
    o2 = bn_apply(y.reshape(N * H * W, Cout), scale, shift, r2)
    return o2.reshape(N, H, W, Cout)


def conv1x1(x, w, bias, out_dtype=jnp.bfloat16):
    N, H, W, Cin = x.shape
    Cout = w.shape[-1]
    o = _matmul(x.reshape(N * H * W, Cin), w, bias, out_dtype)
    return o.reshape(N, H, W, Cout)


def conv1x1_dual(x_skip, x_up, w, bias, out_dtype=jnp.bfloat16):
    """1x1 conv over cat((x_skip, x_up), channel) without materializing the cat."""
    N, H, W, Ca = x_skip.shape
    Cb = x_up.shape[-1]
    Cout = w.shape[-1]
    o = _matmul_dual(x_skip.reshape(N * H * W, Ca),
                     x_up.reshape(N * H * W, Cb),
                     w[:Ca], w[Ca:], bias, out_dtype)
    return o.reshape(N, H, W, Cout)


# Shape-cached jit wrappers: the recurrent blocks call the same shapes 6x with
# shared weights, so this keeps the number of distinct compilations small.
conv3x3_bn_relu = jax.jit(conv3x3_bn_relu)
conv1x1 = jax.jit(conv1x1, static_argnames=("out_dtype",))
conv1x1_dual = jax.jit(conv1x1_dual, static_argnames=("out_dtype",))


def max_pool2(x):
    # TODO(synk): fuse the 2x2 max-pool into the following RRCNN 1x1 conv's
    # input BlockSpec instead of materializing the pooled tensor.
    N, H, W, C = x.shape
    return x.reshape(N, H // 2, 2, W // 2, 2, C).max(axis=(2, 4))


def upsample2(x):
    # nn.Upsample(scale_factor=2), default mode='nearest'
    # TODO(synk): fuse the nearest-neighbour expansion into the following 3x3
    # conv's input load instead of materializing the 4x activation in HBM.
    return jnp.repeat(jnp.repeat(x, 2, axis=1), 2, axis=2)


def recurrent_block(x, p, t, final_residual=None):
    # PyTorch: x1 = conv(x); then t times: x1 = conv(x + x1)  (shared params).
    # The "x + x1" adds are fused into the BN+ReLU epilogue of the producing
    # conv; final_residual fuses the RRCNN output add (x0 + x1).
    base = x
    s = conv3x3_bn_relu(base, p, residual=base)               # conv #1 -> x + x1
    for _ in range(t - 1):
        s = conv3x3_bn_relu(s, p, residual=base)              # conv #2..#t
    return conv3x3_bn_relu(s, p, residual=final_residual)     # conv #t+1 (last)


def _rrcnn_core(x0, p, t):
    h = recurrent_block(x0, p['rb1'], t)
    return recurrent_block(h, p['rb2'], t, final_residual=x0)  # fused x0 + x1


def rrcnn_block(x, p, t):
    x0 = conv1x1(x, p['w1x1'], p['b1x1'])
    return _rrcnn_core(x0, p, t)


def rrcnn_block_cat(x_skip, x_up, p, t):
    x0 = conv1x1_dual(x_skip, x_up, p['w1x1'], p['b1x1'])
    return _rrcnn_core(x0, p, t)


def up_conv(x, p):
    return conv3x3_bn_relu(upsample2(x), p)


def r2u_net_forward(x_nchw, params, t=5):
    x = jnp.transpose(x_nchw, (0, 2, 3, 1)).astype(jnp.bfloat16)   # NCHW -> NHWC

    x1 = rrcnn_block(x, params['RRCNN1'], t)
    x2 = rrcnn_block(max_pool2(x1), params['RRCNN2'], t)
    x3 = rrcnn_block(max_pool2(x2), params['RRCNN3'], t)
    x4 = rrcnn_block(max_pool2(x3), params['RRCNN4'], t)
    x5 = rrcnn_block(max_pool2(x4), params['RRCNN5'], t)

    d5 = up_conv(x5, params['up5'])
    d5 = rrcnn_block_cat(x4, d5, params['up_RRCNN5'], t)

    d4 = up_conv(d5, params['up4'])
    d4 = rrcnn_block_cat(x3, d4, params['up_RRCNN4'], t)

    d3 = up_conv(d4, params['up3'])
    d3 = rrcnn_block_cat(x2, d3, params['up_RRCNN3'], t)

    d2 = up_conv(d3, params['up2'])
    d2 = rrcnn_block_cat(x1, d2, params['up_RRCNN2'], t)

    d1 = conv1x1(d2, params['w_final'], params['b_final'],
                 out_dtype=jnp.float32)
    return jnp.transpose(d1, (0, 3, 1, 2))                         # NHWC -> NCHW


# ----------------------------- parameter init -----------------------------

def init_params(key, in_channels=3, out_channels=1):
    keys = iter(jax.random.split(key, 64))

    # 3x3 weights pre-reshaped to (9, Cin, Cout) and pre-cast to bf16; biases,
    # gamma and beta are f32 with shape (1, C).
    def conv3x3_p(cin, cout):
        w = jax.random.normal(next(keys), (3, 3, cin, cout), jnp.float32)
        w = (w / jnp.sqrt(9.0 * cin)).reshape(9, cin, cout).astype(jnp.bfloat16)
        return {'w': w,
                'b': jnp.zeros((1, cout), jnp.float32),
                'gamma': jnp.ones((1, cout), jnp.float32),
                'beta': jnp.zeros((1, cout), jnp.float32)}

    def rrcnn_p(cin, cout):
        w = jax.random.normal(next(keys), (cin, cout), jnp.float32)
        return {'w1x1': (w / jnp.sqrt(float(cin))).astype(jnp.bfloat16),
                'b1x1': jnp.zeros((1, cout), jnp.float32),
                'rb1': conv3x3_p(cout, cout),
                'rb2': conv3x3_p(cout, cout)}

    params = {
        'RRCNN1': rrcnn_p(in_channels, 64),
        'RRCNN2': rrcnn_p(64, 128),
        'RRCNN3': rrcnn_p(128, 256),
        'RRCNN4': rrcnn_p(256, 512),
        'RRCNN5': rrcnn_p(512, 1024),
        'up5': conv3x3_p(1024, 512),
        'up_RRCNN5': rrcnn_p(1024, 512),
        'up4': conv3x3_p(512, 256),
        'up_RRCNN4': rrcnn_p(512, 256),
        'up3': conv3x3_p(256, 128),
        'up_RRCNN3': rrcnn_p(256, 128),
        'up2': conv3x3_p(128, 64),
        'up_RRCNN2': rrcnn_p(128, 64),
    }
    wf = jax.random.normal(next(keys), (64, out_channels), jnp.float32) / 8.0
    params['w_final'] = wf.astype(jnp.bfloat16)
    params['b_final'] = jnp.zeros((1, out_channels), jnp.float32)
    return params


# ----------------------------- main -----------------------------

if __name__ == "__main__":
    key = jax.random.PRNGKey(0)
    pkey, xkey = jax.random.split(key)
    params = init_params(pkey, in_channels=3, out_channels=1)
    # Small input consistent with the module: batch=2, C=3, H=W=64 (NCHW).
    # 64x64 exercises both the row-tiled conv path (level 1) and the
    # full-image path (deeper levels) as well as the row-tiled BN kernel.
    x = jax.random.normal(xkey, (2, 3, 64, 64), jnp.float32)
    out = r2u_net_forward(x, params, t=5)
    out = jax.block_until_ready(out)
    assert out.shape == (2, 1, 64, 64), out.shape
    assert bool(jnp.all(jnp.isfinite(out)))
    print("KERNEL_OK")
</pallas_src>

<mosaic_0001>
module attributes {stable_mosaic.version = 11 : i64} {
  func.func @_mm_kernel(%arg0: i32, %arg1: i32, %arg2: memref<256x3xbf16, #tpu.memory_space<vmem>>, %arg3: memref<3x128xbf16, #tpu.memory_space<vmem>>, %arg4: memref<1x128xf32, #tpu.memory_space<vmem>>, %arg5: memref<256x128xbf16, #tpu.memory_space<vmem>>) attributes {dimension_semantics = [#tpu.dimension_semantics<parallel>, #tpu.dimension_semantics<parallel>], iteration_bounds = array<i64: 1, 32>, scalar_prefetch = 0 : i64, scratch_operands = 0 : i64, tpu.core_type = #tpu.core_type<tc>, window_params = [{transform_indices = @transform_0, window_bounds = array<i64: 256, 3>}, {transform_indices = @transform_1, window_bounds = array<i64: 3, 128>}, {transform_indices = @transform_2, window_bounds = array<i64: 1, 128>}, {transform_indices = @transform_3, window_bounds = array<i64: 256, 128>}]} {
    %c0 = arith.constant 0 : index
    %c0_0 = arith.constant 0 : index
    %0 = vector.load %arg2[%c0, %c0_0] : memref<256x3xbf16, #tpu.memory_space<vmem>>, vector<256x3xbf16>
    %c0_1 = arith.constant 0 : index
    %c0_2 = arith.constant 0 : index
    %1 = vector.load %arg3[%c0_1, %c0_2] : memref<3x128xbf16, #tpu.memory_space<vmem>>, vector<3x128xbf16>
    %cst = arith.constant dense<0.000000e+00> : vector<256x128xf32>
    %2 = tpu.matmul %0, %1, %cst {dimension_numbers = #tpu.dot_dimension_numbers<[1], [0], [0], [1], [0, 0, 1, 1], [], []>} : vector<256x3xbf16>, vector<3x128xbf16>, vector<256x128xf32> -> vector<256x128xf32>
    %c0_3 = arith.constant 0 : index
    %c0_4 = arith.constant 0 : index
    %3 = vector.load %arg4[%c0_3, %c0_4] : memref<1x128xf32, #tpu.memory_space<vmem>>, vector<1x128xf32>
    %4 = vector.broadcast %3 : vector<1x128xf32> to vector<256x128xf32>
    %5 = arith.addf %2, %4 : vector<256x128xf32>
    %6 = arith.truncf %5 : vector<256x128xf32> to vector<256x128xbf16>
    %c0_5 = arith.constant 0 : index
    %c0_6 = arith.constant 0 : index
    %7 = vector.load %arg5[%c0_5, %c0_6] : memref<256x128xbf16, #tpu.memory_space<vmem>>, vector<256x128xbf16>
    tpu.vector_store %arg5[%c0_5, %c0_6], %6 {strides = array<i32>} : memref<256x128xbf16, #tpu.memory_space<vmem>>, vector<256x128xbf16>,
    return
  }
  func.func @transform_0(%arg0: i32, %arg1: i32) -> (i32, i32) {
    %c0_i32 = arith.constant 0 : i32
    %c0_i32_0 = arith.constant 0 : i32
    return %arg1, %c0_i32 : i32, i32
  }
  func.func @transform_1(%arg0: i32, %arg1: i32) -> (i32, i32) {
    %c0_i32 = arith.constant 0 : i32
    %c0_i32_0 = arith.constant 0 : i32
    return %c0_i32, %arg0 : i32, i32
  }
  func.func @transform_2(%arg0: i32, %arg1: i32) -> (i32, i32) {
    %c0_i32 = arith.constant 0 : i32
    %c0_i32_0 = arith.constant 0 : i32
    return %c0_i32, %arg0 : i32, i32
  }
  func.func @transform_3(%arg0: i32, %arg1: i32) -> (i32, i32) {
    %c0_i32 = arith.constant 0 : i32
    return %arg1, %arg0 : i32, i32
  }
}

</mosaic_0001>

<bundles_post_ra>
// kernel: conv1x1.1
= control target key start
LH: loop header
LB: loop body
LE: loop exit
PB: predicated region body
PF: predicated region fallthrough
CT: control target
= control target key end

     0   :  { %8 = vsyncpa [#allocation3], 0  ;;  %s1479_s0 = inlined_call_operand.vmem [shape: bf16[8192,3], index: 0, kind: input, shape index: {}]   ;;  %s1480_s1 = inlined_call_operand.vmem [shape: bf16[3,128], index: 1, kind: input, shape index: {}]   ;;  %s1481_s2 = inlined_call_operand.vmem [shape: f32[1,128], index: 2, kind: input, shape index: {}]   ;;  %s1482_s3 = inlined_call_operand.hbm [shape: bf16[8192,128], index: 3, kind: output, shape index: {}]  }
   0x1   :  { %10 = vsyncpa [#allocation3 + $0x1], 0  ;;  %s1268_s12 = smov 0   ;;  %s1270_s13 = smov 0  }
   0x2   :  { %s1272_s14 = smov 0   ;;  %s1274_s15 = smov 0  }
   0x3   :  { %s1276_s16 = smov 0   ;;  %s1278_s17 = smov 0  }
   0x4 LB: > { %s829_s18 = sadd.s32 4294967295, %s1242_s17   ;;  %s830_s19 = sadd.s32 4294967294, %s1242_s17   ;;  %s1242_s17 = sphi %s1278_s17, %s16_s17   ;;  %s1238_s16 = sphi %s1276_s16, %s1489_s16   ;;  %s1234_s15 = sphi %s1274_s15, %s1488_s15   ;;  %s1230_s14 = sphi %s1272_s14, %s1487_s14   ;;  %s1226_s13 = sphi %s1270_s13, %s1486_s13   ;;  %s1222_s12 = sphi %s1268_s12, %s1485_s12  }
   0x5   : > { %s25_s20 = sadd.s32 1, %s1238_s16  ;;  %s115_s21 = sadd.s32 1, %s1230_s14 }
   0x6   : > { %p26_p0 = scmp.ge.s32.totalorder %s25_s20, 32  ;;  %p125_p1 = scmp.ne.s32.totalorder %s1230_s14, %s1226_s13 }
   0x7   : > { %p126_p2 = scmp.eq.s32.totalorder %s829_s18, 31  ;;  %p131_p3 = scmp.ne.s32.totalorder %s1226_s13, %s1222_s12 }
   0x8   : > { %s1491_s20 = smov (%p26_p0, %s25_s20), 0  ;;  %p132_p5 = scmp.eq.s32.totalorder %s830_s19, 31 }
   0x9   : > { %p1308_p4 = por %p126_p2, %p125_p1  ;;  %s110_s23 = ssub.s32 %s1238_s16, %s1491_s20 }
   0xa   : > { %p835_p6 = scmp.ge.s32.totalorder %s1242_s17, 1  ;;  %p113_p7 = scmp.eq.s32.totalorder %s110_s23, 0 }
   0xb   : > { %p1315_p8 = por %p132_p5, %p131_p3  ;;  %p172_p9 = scmp.lt.s32.totalorder %s1242_s17, 33 }
   0xc   : > { %s1321_s25 = scalar_select %p113_p7, %s1230_s14, %s115_s21  }
   0xd   : > { %p173_p10 = pnand %p835_p6, %p172_p9 }
   0xe   : > { %v250_v0 = vld [vmem:[%s1480_s1] sm:$0x3] (!%p173_p10)  ;;  %vm387_vm0 = vcmask (!%p173_p10), 1040384   ;;  %vm388_vm1 = vcmask (!%p173_p10), 1041408   ;;  %s837_s28 = sshll.u32 (!%p173_p10), %s1234_s15, 5  ;;  %v1244_v1 = vmov (!%p173_p10), 65535  }
   0xf   : > { %176 = sbr.rel (%p173_p10) target bundleno = 286 (0x11e), region = 32  ;;  %v389_v2 = vsel (!%p173_p10), %vm387_vm0, 4294967295, %v1244_v1  ;;  %p204_p11 = scmp.lt.s32.totalorder (!%p173_p10), %s837_s28, 1023  ;;  %vm338_vm2 = vcmask (!%p173_p10), 23552   ;;  %v1368_v22 = vld [vmem:[%s1481_s2] ss:$0 sm:$0xff] (!%p173_p10) }
  0x10   : > { %v390_v3 = vsel (!%p173_p10), %vm388_vm1, %v389_v2, 0  ;;  %s200_s6 = sand.u32 (!%p173_p10), 1, %s1226_s13   ;;  %s941_s11 = sshll.u32 (!%p173_p10), %s1234_s15, 11 }
  0x11   : > { %v392_v4 = vand.u32 (!%p173_p10), %v390_v3, %v250_v0  ;;  %s836_s9 = sshll.u32 (!%p173_p10), %s200_s6, 7  ;;  %s1423_s21 = scalar_lea.hbm (!%p173_p10), %s1482_s3, %s941_s11 }
  0x12   : > { %s1380_s10 = scalar_lea.vmem (!%p173_p10), [#allocation2], %s836_s9  ;;  %s1433_s23 = scalar_lea.sflag (!%p173_p10), [#allocation3], %s200_s6 }
  0x13   : > { %1054 = vmatprep.subr.bf16.mxu0 (!%p173_p10), %v392_v4  ;;  %1088 = vmatprep.subr.bf16.mxu1 (!%p173_p10), %v392_v4  ;;  %s730_s18 = sshll.u32 (!%p173_p10), %s1380_s10, 4  ;;  %s1245_s27 = smov (!%p173_p10), [#allocation2]   ;;  %s1425_s18 = int_to_ptr.vmem [resolvable:$true] %s730_s18 }
  0x14   : > { %1055 = vmatpush3.bf16.msra.mxu0 (!%p173_p10), %v392_v4  ;;  %1089 = vmatpush3.bf16.msra.mxu1 (!%p173_p10), %v392_v4  ;;  %s1164_s26 = scalar_lea.vmem (!%p173_p10), %s1425_s18, 2048 }
  0x15   : > { %p1165_p12 = scmp.ne.s32.totalorder (!%p173_p10), %s1425_s18, %s1164_s26 }
  0x16   : > { %s1493_s28 = smov (!%p204_p11, %s837_s28), 1023 }
  0x17   : > { %s838_s29 = sshll.u32 %s1493_s28, 2  ;;  %p1166_p13 = pnand %p1165_p12, %p1308_p4 }
  0x18   : > { %s1330_s5 = scalar_lea.vmem %s1479_s0, %s838_s29  ;;  %s1168_s28 = sshll.u32 %s1245_s27, 4  ;;  %s1169_s28 = int_to_ptr.vmem [resolvable:$false] %s1168_s28 }
  0x19   : > { %v1148_v5 = vld [vmem:[%s1330_s5] sm:$0xff]   ;;  %v1150_v7 = vld [vmem:[%s1330_s5 + $0x8] sm:$0xff]   ;;  %v1152_v9 = vld [vmem:[%s1330_s5 + $0x10] sm:$0xff]   ;;  %p1167_p0 = pneg %p1166_p13  ;;  %s1170_s29 = scalar_lea.vmem %s1169_s28, 4096 }
  0x1a   : > { %v1149_v6 = vld [vmem:[%s1330_s5 + $0x40] sm:$0xff]   ;;  %1056 = vmatprep.mubr.msk.bf16.mxu0 %vm338_vm2, %v1148_v5  ;;  %v1151_v8 = vld [vmem:[%s1330_s5 + $0x48] sm:$0xff]   ;;  %v1153_v10 = vld [vmem:[%s1330_s5 + $0x50] sm:$0xff]   ;;  %p1171_p1 = scmp.lt.s32.totalorder %s1425_s18, %s1169_s28  ;;  %p1172_p2 = scmp.lt.s32.totalorder %s1170_s29, %s1164_s26 }
  0x1b   : > { %1072 = vmatprep.mubr.msk.bf16.mxu1 %vm338_vm2, %v1149_v6  ;;  %1057 = vmatmul.mubr.msk.bf16.vlgmr.msra.gmra.mrb[0].mxu0 %vm338_vm2, %v1150_v7  ;;  %v1154_v11 = vld [vmem:[%s1330_s5 + $0x18] sm:$0xff]   ;;  %v1156_v13 = vld [vmem:[%s1330_s5 + $0x20] sm:$0xff]   ;;  %v1158_v15 = vld [vmem:[%s1330_s5 + $0x28] sm:$0xff]  }
  0x1c   : > { %1073 = vmatmul.mubr.msk.bf16.vlgmr.msra.gmra.mrb[0].mxu1 %vm338_vm2, %v1151_v8  ;;  %1060 = vmatprep.mubr.msk.bf16.mxu0 %vm338_vm2, %v1152_v9  ;;  %v1155_v12 = vld [vmem:[%s1330_s5 + $0x58] sm:$0xff]   ;;  %v1157_v14 = vld [vmem:[%s1330_s5 + $0x60] sm:$0xff]   ;;  %v1159_v16 = vld [vmem:[%s1330_s5 + $0x68] sm:$0xff]   ;;  %p1173_p3 = por %p1172_p2, %p1171_p1 }
  0x1d   : > { %1076 = vmatprep.mubr.msk.bf16.mxu1 %vm338_vm2, %v1153_v10  ;;  %v1160_v17 = vld [vmem:[%s1330_s5 + $0x30] sm:$0xff]   ;;  %v1162_v19 = vld [vmem:[%s1330_s5 + $0x38] sm:$0xff]  }
  0x1e   : > { %v1161_v18 = vld [vmem:[%s1330_s5 + $0x70] sm:$0xff]   ;;  %v1163_v20 = vld [vmem:[%s1330_s5 + $0x78] sm:$0xff]   ;;  %p1174_p5 = pnand %p1173_p3, %p1167_p0 }
  0x23   : > { %1061 = vmatmul.mubr.msk.bf16.gmra.mrb[4].mxu0 %vm338_vm2, %v1154_v11 }
  0x24   : > { %1077 = vmatmul.mubr.msk.bf16.gmra.mrb[4].mxu1 %vm338_vm2, %v1155_v12  ;;  %1064 = vmatprep.mubr.msk.bf16.mxu0 %vm338_vm2, %v1156_v13 }
  0x25   : > { %1080 = vmatprep.mubr.msk.bf16.mxu1 %vm338_vm2, %v1157_v14 }
  0x2b   : > { %1065 = vmatmul.mubr.msk.bf16.gmra.mrb[8].mxu0 %vm338_vm2, %v1158_v15 }
  0x2c   : > { %1081 = vmatmul.mubr.msk.bf16.gmra.mrb[8].mxu1 %vm338_vm2, %v1159_v16  ;;  %1068 = vmatprep.mubr.msk.bf16.mxu0 %vm338_vm2, %v1160_v17 }
  0x2d   : > { %1084 = vmatprep.mubr.msk.bf16.mxu1 %vm338_vm2, %v1161_v18 }
  0x33   : > { %1069 = vmatmul.mubr.msk.bf16.gmra.mrb[12].mxu0 %vm338_vm2, %v1162_v19 }
  0x34   : > { %1085 = vmatmul.mubr.msk.bf16.gmra.mrb[12].mxu1 %vm338_vm2, %v1163_v20 }
  0xee   : > { %v1058_v21 = vpop.f32.mrb[0].mxu0 }
  0xef   : > { %v1074_v23 = vpop.f32.mrb[0].mxu1  ;;  %v428_v24 = vpop.f32.mrb[1].mxu0  ;;  %v437_v27 = vadd.f32 %v1058_v21, %v1368_v22 }
  0xf0   : > { %v492_v25 = vpop.f32.mrb[1].mxu1  ;;  %v1059_v26 = vpop.f32.mrb[2].mxu0  ;;  %v501_v31 = vadd.f32 %v1074_v23, %v1368_v22  ;;  %v429_v32 = vadd.f32 %v1368_v22, %v428_v24 }
  0xf1   : > { %v440_v28 = vadd.f32 %v1059_v26, %v1368_v22  ;;  %v1075_v29 = vpop.f32.mrb[2].mxu1  ;;  %v431_v30 = vpop.f32.mrb[3].mxu0  ;;  %v493_v36 = vadd.f32 %v1368_v22, %v492_v25 }
  0xf2   : > { %v504_v33 = vadd.f32 %v1075_v29, %v1368_v22  ;;  %v432_v34 = vadd.f32 %v1368_v22, %v431_v30  ;;  %v495_v35 = vpop.f32.mrb[3].mxu1 }
  0xf3   : > { %v950_v37 = vpack.c.bf16 %v440_v28, %v437_v27  ;;  %v496_v38 = vadd.f32 %v1368_v22, %v495_v35 }
  0xf4   : > { %v990_v39 = vpack.c.bf16 %v504_v33, %v501_v31  ;;  %v945_v40 = vpack.c.bf16 %v432_v34, %v429_v32 }
  0xf5   : > { %1022 = vst [vmem:[%s1380_s10 + $0x8] sm:$0xff] %v950_v37   ;;  %v985_v41 = vpack.c.bf16 %v496_v38, %v493_v36 }
  0xf6   : > { %1030 = vst [vmem:[%s1380_s10 + $0x48] sm:$0xff] %v990_v39   ;;  %946 = vst [vmem:[%s1380_s10] sm:$0xff] %v945_v40   ;;  %v1062_v42 = vpop.f32.mrb[4].mxu0 }
  0xf7   : > { %1029 = vst [vmem:[%s1380_s10 + $0x40] sm:$0xff] %v985_v41   ;;  %v1078_v43 = vpop.f32.mrb[4].mxu1  ;;  %v444_v44 = vpop.f32.mrb[5].mxu0  ;;  %v453_v47 = vadd.f32 %v1062_v42, %v1368_v22 }
  0xf8   : > { %v508_v45 = vpop.f32.mrb[5].mxu1  ;;  %v1063_v46 = vpop.f32.mrb[6].mxu0  ;;  %v517_v51 = vadd.f32 %v1078_v43, %v1368_v22  ;;  %v445_v52 = vadd.f32 %v1368_v22, %v444_v44 }
  0xf9   : > { %v456_v48 = vadd.f32 %v1063_v46, %v1368_v22  ;;  %v1079_v49 = vpop.f32.mrb[6].mxu1  ;;  %v447_v50 = vpop.f32.mrb[7].mxu0  ;;  %v509_v56 = vadd.f32 %v1368_v22, %v508_v45 }
  0xfa   : > { %v520_v53 = vadd.f32 %v1079_v49, %v1368_v22  ;;  %v448_v54 = vadd.f32 %v1368_v22, %v447_v50  ;;  %v511_v55 = vpop.f32.mrb[7].mxu1 }
  0xfb   : > { %v960_v57 = vpack.c.bf16 %v456_v48, %v453_v47  ;;  %v512_v58 = vadd.f32 %v1368_v22, %v511_v55 }
  0xfc   : > { %v1000_v59 = vpack.c.bf16 %v520_v53, %v517_v51  ;;  %v955_v60 = vpack.c.bf16 %v448_v54, %v445_v52 }
  0xfd   : > { %1024 = vst [vmem:[%s1380_s10 + $0x18] sm:$0xff] %v960_v57   ;;  %v995_v61 = vpack.c.bf16 %v512_v58, %v509_v56 }
  0xfe   : > { %1032 = vst [vmem:[%s1380_s10 + $0x58] sm:$0xff] %v1000_v59   ;;  %1023 = vst [vmem:[%s1380_s10 + $0x10] sm:$0xff] %v955_v60   ;;  %v1066_v62 = vpop.f32.mrb[8].mxu0 }
  0xff   : > { %1031 = vst [vmem:[%s1380_s10 + $0x50] sm:$0xff] %v995_v61   ;;  %v1082_v63 = vpop.f32.mrb[8].mxu1  ;;  %v460_v0 = vpop.f32.mrb[9].mxu0  ;;  %v469_v3 = vadd.f32 %v1066_v62, %v1368_v22 }
 0x100   : > { %v524_v1 = vpop.f32.mrb[9].mxu1  ;;  %v1067_v2 = vpop.f32.mrb[10].mxu0  ;;  %v533_v7 = vadd.f32 %v1082_v63, %v1368_v22  ;;  %v461_v8 = vadd.f32 %v1368_v22, %v460_v0 }
 0x101   : > { %v472_v4 = vadd.f32 %v1067_v2, %v1368_v22  ;;  %v1083_v5 = vpop.f32.mrb[10].mxu1  ;;  %v463_v6 = vpop.f32.mrb[11].mxu0  ;;  %v525_v12 = vadd.f32 %v1368_v22, %v524_v1 }
 0x102   : > { %v536_v9 = vadd.f32 %v1083_v5, %v1368_v22  ;;  %v464_v10 = vadd.f32 %v1368_v22, %v463_v6  ;;  %v527_v11 = vpop.f32.mrb[11].mxu1 }
 0x103   : > { %v970_v13 = vpack.c.bf16 %v472_v4, %v469_v3  ;;  %v528_v14 = vadd.f32 %v1368_v22, %v527_v11 }
 0x104   : > { %v1010_v15 = vpack.c.bf16 %v536_v9, %v533_v7  ;;  %v965_v16 = vpack.c.bf16 %v464_v10, %v461_v8 }
 0x105   : > { %1026 = vst [vmem:[%s1380_s10 + $0x28] sm:$0xff] %v970_v13   ;;  %v1005_v17 = vpack.c.bf16 %v528_v14, %v525_v12 }
 0x106   : > { %1034 = vst [vmem:[%s1380_s10 + $0x68] sm:$0xff] %v1010_v15   ;;  %1025 = vst [vmem:[%s1380_s10 + $0x20] sm:$0xff] %v965_v16   ;;  %v1070_v18 = vpop.f32.mrb[12].mxu0 }
 0x107   : > { %1033 = vst [vmem:[%s1380_s10 + $0x60] sm:$0xff] %v1005_v17   ;;  %v1086_v19 = vpop.f32.mrb[12].mxu1  ;;  %v476_v20 = vpop.f32.mrb[13].mxu0  ;;  %v485_v24 = vadd.f32 %v1070_v18, %v1368_v22 }
 0x108   : > { %v540_v21 = vpop.f32.mrb[13].mxu1  ;;  %v1071_v23 = vpop.f32.mrb[14].mxu0  ;;  %v549_v28 = vadd.f32 %v1086_v19, %v1368_v22  ;;  %v477_v29 = vadd.f32 %v1368_v22, %v476_v20 }
 0x109   : > { %v488_v25 = vadd.f32 %v1071_v23, %v1368_v22  ;;  %v1087_v26 = vpop.f32.mrb[14].mxu1  ;;  %v479_v27 = vpop.f32.mrb[15].mxu0  ;;  %v541_v33 = vadd.f32 %v1368_v22, %v540_v21 }
 0x10a   : > { %v552_v30 = vadd.f32 %v1087_v26, %v1368_v22  ;;  %v480_v31 = vadd.f32 %v1368_v22, %v479_v27  ;;  %v543_v32 = vpop.f32.mrb[15].mxu1 }
 0x10b   : > { %v980_v34 = vpack.c.bf16 %v488_v25, %v485_v24  ;;  %v544_v35 = vadd.f32 %v1368_v22, %v543_v32 }
 0x10c   : > { %v1020_v36 = vpack.c.bf16 %v552_v30, %v549_v28  ;;  %v975_v37 = vpack.c.bf16 %v480_v31, %v477_v29 }
 0x10d   : > { %1028 = vst [vmem:[%s1380_s10 + $0x38] sm:$0xff] %v980_v34   ;;  %v1015_v38 = vpack.c.bf16 %v544_v35, %v541_v33 }
 0x10e   : > { %1036 = vst [vmem:[%s1380_s10 + $0x78] sm:$0xff] %v1020_v36   ;;  %1027 = vst [vmem:[%s1380_s10 + $0x30] sm:$0xff] %v975_v37  }
 0x10f   : > { %1035 = vst [vmem:[%s1380_s10 + $0x70] sm:$0xff] %v1015_v38  }
 0x110   : > { %1177 = shalt.err (!%p1174_p5)
}
 0x111   : > { %s1178_s30 = scalar_lea.hbm %s1423_s21, 2048  ;;  %s1182_s6 = scalar_lea.hbm %s1482_s3, 65536 }
 0x112   : > { %p1179_p6 = scmp.ne.s32.totalorder %s1423_s21, %s1178_s30  ;;  %p1183_p10 = scmp.lt.u32.totalorder %s1423_s21, %s1482_s3 }
 0x113   : > { %p1184_p11 = scmp.lt.u32.totalorder %s1182_s6, %s1178_s30  ;;  %p1186_p13 = scmp.lt.u32.totalorder %s1178_s30, %s1423_s21 }
 0x114   : > { %p1180_p7 = pnand %p1179_p6, %p1308_p4 }
 0x115   : > { %p1185_p12 = por %p1184_p11, %p1183_p10 }
 0x116   : > { %p1181_p9 = pneg %p1180_p7 }
 0x117   : > { %p1187_p0 = por %p1186_p13, %p1185_p12 }
 0x119   : > { %p1188_p1 = pnand %p1187_p0, %p1181_p9 }
 0x11b   : > { %1191 = shalt.err (!%p1188_p1)
}
 0x11c   : > { %s1246_s9 = smov 64   ;;  %s1247_s10 = smov 4  }
 0x11d   : > { %1090 = dma.vmem_to_hbm [thread:$0]  (%p1308_p4), %s1425_s18, 2048, %s1423_s21, %s1433_s23, %s1246_s9, %s1246_s9, %s1247_s10  }
 0x11e PF: > { %p1096_p2 = scmp.ge.s32.totalorder %s1242_s17, 2  ;;  %s745_s11 = sand.u32 1, %s1222_s12  }
 0x11f   : > { %s746_s15 = scalar_lea.sflag [#allocation3], %s745_s11 }
 0x120   : > { %p1093_p3 = pnand %p1096_p2, %p1315_p8 }
 0x122   : > { %1217 = dma.done.wait (!%p1093_p3), %s746_s15, 2048  }
 0x123   : > { %1219 = vsyncadd (!%p1093_p3), %s746_s15, 4294965248  ;;  %s16_s17 = sadd.s32 1, %s1242_s17   ;;  %s1485_s12 = smov %s1226_s13 }
 0x124   : > { %p13_p5 = scmp.ge.s32.totalorder %s16_s17, 34   ;;  %s1486_s13 = smov %s1230_s14 }
 0x125   : > { %s1487_s14 = smov %s1321_s25  ;;  %s1488_s15 = smov %s1238_s16 }
 0x126   : > { %s1489_s16 = smov %s1491_s20  ;;  %15 = sbr.rel (!%p13_p5) target bundleno = 4 (0x4), region = 73 }
 0x12d   :  { %751 = vsyncpa [#allocation3], 1 }
 0x12e   :  { %753 = vsyncpa [#allocation3 + $0x1], 1 }

</bundles_post_ra>
